<compile_context>
chip_gen: v6e
topology: v6e:2x2x1
jax: 0.10.0
libtpu: 0.0.40
codegen_flags: <defaults>
</compile_context>

<pallas_src>
import functools

import jax
import jax.numpy as jnp
from jax.experimental import pallas as pl
from jax.experimental.pallas import tpu as pltpu


def _max_value(dtype):
    """Identity element for `min` in this dtype (out-of-bounds fill)."""
    if jnp.issubdtype(dtype, jnp.floating):
        return jnp.array(jnp.inf, dtype=dtype)
    return jnp.array(jnp.iinfo(dtype).max, dtype=dtype)


def _erosion_kernel(x_ref, o_ref, *, k: int, H: int, W: int):
    # x_ref / o_ref: (P_BLK, H*W) -- each row is one flattened (H, W) plane.
    pad = k // 2
    HW = H * W
    x = x_ref[...]
    maxval = _max_value(x.dtype)

    # Flat within-plane index and column index (built once, reused for masks).
    flat = jax.lax.broadcasted_iota(jnp.int32, x.shape, 1)
    col = flat % W

    # Pass 1: running min along W.  Shift by +-s lanes; taps that fall outside
    # the current row (or wrap around the plane) are masked to dtype max.
    m = x
    for d in range(1, pad + 1):
        for s in (d, -d):
            shifted = pltpu.roll(x, (-s) % HW, axis=1)     # value at col + s
            valid = (col + s >= 0) & (col + s < W)
            m = jnp.minimum(m, jnp.where(valid, shifted, maxval))

    # Pass 2: running min along H.  A row shift by +-s is a lane shift by
    # +-s*W on the flattened plane; taps outside the plane are masked to max.
    out = m
    for d in range(1, pad + 1):
        for s in (d, -d):
            shifted = pltpu.roll(m, (-s * W) % HW, axis=1)  # value at row + s
            valid = (flat + s * W >= 0) & (flat + s * W < HW)
            out = jnp.minimum(out, jnp.where(valid, shifted, maxval))

    o_ref[...] = out


def _pick_block_planes(num_planes: int, plane_bytes: int,
                       target_bytes: int = 2 * 1024 * 1024) -> int:
    """Largest whole-plane block height that fits the per-buffer budget."""
    budget = max(1, target_bytes // plane_bytes)
    if num_planes <= budget:
        return num_planes
    divisors = [d for d in range(1, num_planes + 1) if num_planes % d == 0]
    sublane_aligned = [d for d in divisors if d <= budget and d % 8 == 0]
    if sublane_aligned:
        return max(sublane_aligned)
    return max(d for d in divisors if d <= budget)


def erosion(img: jax.Array, kernel: int = 3) -> jax.Array:
    """Min-filter (erosion) over each HxW plane of an NCHW tensor."""
    assert kernel % 2 == 1 and kernel >= 1
    N, C, H, W = img.shape
    if kernel == 1:
        return img

    P = N * C
    HW = H * W
    x2d = img.reshape(P, HW)                       # free reshape, no HBM pass

    plane_bytes = HW * jnp.dtype(img.dtype).itemsize
    p_blk = _pick_block_planes(P, plane_bytes)
    grid = (P // p_blk,)
    # TODO(synk): if a single plane ever exceeds the VMEM budget (e.g. 4k x 4k
    # f32 on v7x's 64 MiB VMEM), add H-tiling with a kernel//2 halo per tile.

    kern = functools.partial(_erosion_kernel, k=kernel, H=H, W=W)

    out2d = pl.pallas_call(
        kern,
        out_shape=jax.ShapeDtypeStruct((P, HW), img.dtype),
        grid_spec=pltpu.PrefetchScalarGridSpec(
            num_scalar_prefetch=0,
            grid=grid,
            in_specs=[pl.BlockSpec((p_blk, HW), lambda i: (i, 0))],
            out_specs=pl.BlockSpec((p_blk, HW), lambda i: (i, 0)),
        ),
        compiler_params=pltpu.CompilerParams(
            dimension_semantics=("parallel",),
        ),
    )(x2d)
    return out2d.reshape(N, C, H, W)


def _erosion_ref(img: jax.Array, kernel: int = 3) -> jax.Array:
    """Pure-JAX reference (edge-replicated min filter) for validation."""
    pad = kernel // 2
    xp = jnp.pad(img, ((0, 0), (0, 0), (pad, pad), (pad, pad)), mode="edge")
    N, C, H, W = img.shape
    out = None
    for di in range(kernel):
        for dj in range(kernel):
            win = xp[:, :, di:di + H, dj:dj + W]
            out = win if out is None else jnp.minimum(out, win)
    return out


if __name__ == "__main__":
    key = jax.random.PRNGKey(0)
    # Small NCHW image batch: batch=2, channels=4, spatial=16x16.
    x = jax.random.uniform(key, (2, 4, 16, 16), dtype=jnp.float32)

    y = erosion(x, kernel=3)
    y = jax.block_until_ready(y)

    y_ref = _erosion_ref(x, kernel=3)
    assert y.shape == (2, 4, 16, 16)
    assert jnp.allclose(y, y_ref), "Pallas erosion mismatch vs JAX reference"

    print("KERNEL_OK")
</pallas_src>

<mosaic_0001>
module attributes {stable_mosaic.version = 11 : i64} {
  func.func @_erosion_kernel(%arg0: i32, %arg1: memref<8x256xf32, #tpu.memory_space<vmem>>, %arg2: memref<8x256xf32, #tpu.memory_space<vmem>>) attributes {dimension_semantics = [#tpu.dimension_semantics<parallel>], iteration_bounds = array<i64: 1>, scalar_prefetch = 0 : i64, scratch_operands = 0 : i64, tpu.core_type = #tpu.core_type<tc>, window_params = [{transform_indices = @transform_0, window_bounds = array<i64: 8, 256>}, {transform_indices = @transform_1, window_bounds = array<i64: 8, 256>}]} {
    %c0 = arith.constant 0 : index
    %c0_0 = arith.constant 0 : index
    %0 = vector.load %arg1[%c0, %c0_0] : memref<8x256xf32, #tpu.memory_space<vmem>>, vector<8x256xf32>
    %1 = tpu.iota {dimensions = array<i32: 1>} : vector<8x256xi32>
    %c16_i32 = arith.constant 16 : i32
    %c0_i32 = arith.constant 0 : i32
    %2 = arith.cmpi eq, %c16_i32, %c0_i32 : i32
    %c1_i32 = arith.constant 1 : i32
    %3 = arith.select %2, %c1_i32, %c16_i32 : i32
    %4 = vector.broadcast %3 : i32 to vector<8x256xi32>
    %5 = arith.remsi %1, %4 : vector<8x256xi32>
    %c0_i32_1 = arith.constant 0 : i32
    %6 = vector.broadcast %c0_i32_1 : i32 to vector<8x256xi32>
    %7 = arith.cmpi ne, %5, %6 : vector<8x256xi32>
    %c0_i32_2 = arith.constant 0 : i32
    %8 = vector.broadcast %c0_i32_2 : i32 to vector<8x256xi32>
    %9 = arith.cmpi slt, %5, %8 : vector<8x256xi32>
    %c0_i32_3 = arith.constant 0 : i32
    %10 = arith.cmpi slt, %3, %c0_i32_3 : i32
    %11 = vector.broadcast %10 : i1 to vector<8x256xi1>
    %12 = vector.broadcast %11 : vector<8x256xi1> to vector<8x256xi1>
    %13 = arith.xori %9, %12 : vector<8x256xi1>
    %14 = arith.andi %13, %7 : vector<8x256xi1>
    %15 = vector.broadcast %3 : i32 to vector<8x256xi32>
    %16 = arith.addi %5, %15 : vector<8x256xi32>
    %17 = arith.select %14, %16, %5 : vector<8x256xi1>, vector<8x256xi32>
    %c255_i32 = arith.constant 255 : i32
    %18 = tpu.dynamic_rotate %0 by %c255_i32 dim 1 : vector<8x256xf32>, i32 -> vector<8x256xf32>
    %c1_i32_4 = arith.constant 1 : i32
    %19 = vector.broadcast %c1_i32_4 : i32 to vector<8x256xi32>
    %20 = arith.addi %17, %19 : vector<8x256xi32>
    %c0_i32_5 = arith.constant 0 : i32
    %21 = vector.broadcast %c0_i32_5 : i32 to vector<8x256xi32>
    %22 = arith.cmpi sge, %20, %21 : vector<8x256xi32>
    %c1_i32_6 = arith.constant 1 : i32
    %23 = vector.broadcast %c1_i32_6 : i32 to vector<8x256xi32>
    %24 = arith.addi %17, %23 : vector<8x256xi32>
    %c16_i32_7 = arith.constant 16 : i32
    %25 = vector.broadcast %c16_i32_7 : i32 to vector<8x256xi32>
    %26 = arith.cmpi slt, %24, %25 : vector<8x256xi32>
    %27 = arith.andi %22, %26 : vector<8x256xi1>
    %cst = arith.constant 0x7F800000 : f32
    %28 = vector.broadcast %cst : f32 to vector<8x256xf32>
    %29 = arith.select %27, %18, %28 : vector<8x256xi1>, vector<8x256xf32>
    %30 = arith.minimumf %0, %29 : vector<8x256xf32>
    %c1_i32_8 = arith.constant 1 : i32
    %31 = tpu.dynamic_rotate %0 by %c1_i32_8 dim 1 : vector<8x256xf32>, i32 -> vector<8x256xf32>
    %c-1_i32 = arith.constant -1 : i32
    %32 = vector.broadcast %c-1_i32 : i32 to vector<8x256xi32>
    %33 = arith.addi %17, %32 : vector<8x256xi32>
    %c0_i32_9 = arith.constant 0 : i32
    %34 = vector.broadcast %c0_i32_9 : i32 to vector<8x256xi32>
    %35 = arith.cmpi sge, %33, %34 : vector<8x256xi32>
    %c-1_i32_10 = arith.constant -1 : i32
    %36 = vector.broadcast %c-1_i32_10 : i32 to vector<8x256xi32>
    %37 = arith.addi %17, %36 : vector<8x256xi32>
    %c16_i32_11 = arith.constant 16 : i32
    %38 = vector.broadcast %c16_i32_11 : i32 to vector<8x256xi32>
    %39 = arith.cmpi slt, %37, %38 : vector<8x256xi32>
    %40 = arith.andi %35, %39 : vector<8x256xi1>
    %cst_12 = arith.constant 0x7F800000 : f32
    %41 = vector.broadcast %cst_12 : f32 to vector<8x256xf32>
    %42 = arith.select %40, %31, %41 : vector<8x256xi1>, vector<8x256xf32>
    %43 = arith.minimumf %30, %42 : vector<8x256xf32>
    %c240_i32 = arith.constant 240 : i32
    %44 = tpu.dynamic_rotate %43 by %c240_i32 dim 1 : vector<8x256xf32>, i32 -> vector<8x256xf32>
    %c16_i32_13 = arith.constant 16 : i32
    %45 = vector.broadcast %c16_i32_13 : i32 to vector<8x256xi32>
    %46 = arith.addi %1, %45 : vector<8x256xi32>
    %c0_i32_14 = arith.constant 0 : i32
    %47 = vector.broadcast %c0_i32_14 : i32 to vector<8x256xi32>
    %48 = arith.cmpi sge, %46, %47 : vector<8x256xi32>
    %c16_i32_15 = arith.constant 16 : i32
    %49 = vector.broadcast %c16_i32_15 : i32 to vector<8x256xi32>
    %50 = arith.addi %1, %49 : vector<8x256xi32>
    %c256_i32 = arith.constant 256 : i32
    %51 = vector.broadcast %c256_i32 : i32 to vector<8x256xi32>
    %52 = arith.cmpi slt, %50, %51 : vector<8x256xi32>
    %53 = arith.andi %48, %52 : vector<8x256xi1>
    %cst_16 = arith.constant 0x7F800000 : f32
    %54 = vector.broadcast %cst_16 : f32 to vector<8x256xf32>
    %55 = arith.select %53, %44, %54 : vector<8x256xi1>, vector<8x256xf32>
    %56 = arith.minimumf %43, %55 : vector<8x256xf32>
    %c16_i32_17 = arith.constant 16 : i32
    %57 = tpu.dynamic_rotate %43 by %c16_i32_17 dim 1 : vector<8x256xf32>, i32 -> vector<8x256xf32>
    %c-16_i32 = arith.constant -16 : i32
    %58 = vector.broadcast %c-16_i32 : i32 to vector<8x256xi32>
    %59 = arith.addi %1, %58 : vector<8x256xi32>
    %c0_i32_18 = arith.constant 0 : i32
    %60 = vector.broadcast %c0_i32_18 : i32 to vector<8x256xi32>
    %61 = arith.cmpi sge, %59, %60 : vector<8x256xi32>
    %c-16_i32_19 = arith.constant -16 : i32
    %62 = vector.broadcast %c-16_i32_19 : i32 to vector<8x256xi32>
    %63 = arith.addi %1, %62 : vector<8x256xi32>
    %c256_i32_20 = arith.constant 256 : i32
    %64 = vector.broadcast %c256_i32_20 : i32 to vector<8x256xi32>
    %65 = arith.cmpi slt, %63, %64 : vector<8x256xi32>
    %66 = arith.andi %61, %65 : vector<8x256xi1>
    %cst_21 = arith.constant 0x7F800000 : f32
    %67 = vector.broadcast %cst_21 : f32 to vector<8x256xf32>
    %68 = arith.select %66, %57, %67 : vector<8x256xi1>, vector<8x256xf32>
    %69 = arith.minimumf %56, %68 : vector<8x256xf32>
    %c0_22 = arith.constant 0 : index
    %c0_23 = arith.constant 0 : index
    %70 = vector.load %arg2[%c0_22, %c0_23] : memref<8x256xf32, #tpu.memory_space<vmem>>, vector<8x256xf32>
    tpu.vector_store %arg2[%c0_22, %c0_23], %69 {strides = array<i32>} : memref<8x256xf32, #tpu.memory_space<vmem>>, vector<8x256xf32>,
    return
  }
  func.func @transform_0(%arg0: i32) -> (i32, i32) {
    %c0_i32 = arith.constant 0 : i32
    %c0_i32_0 = arith.constant 0 : i32
    return %arg0, %c0_i32 : i32, i32
  }
  func.func @transform_1(%arg0: i32) -> (i32, i32) {
    %c0_i32 = arith.constant 0 : i32
    %c0_i32_0 = arith.constant 0 : i32
    return %arg0, %c0_i32 : i32, i32
  }
}

</mosaic_0001>

<bundles_post_ra>
// kernel: tpu_custom_call.1
= control target key start
LH: loop header
LB: loop body
LE: loop exit
PB: predicated region body
PF: predicated region fallthrough
CT: control target
= control target key end

     0   :  { %6 = vsyncpa [#allocation3], 0  ;;  %s215_s0 = inlined_call_operand.hbm [shape: f32[8,256], index: 0, kind: input, shape index: {}]   ;;  %s216_s1 = inlined_call_operand.hbm [shape: f32[8,256], index: 1, kind: output, shape index: {}]  }
   0x1   :  { %7 = vsyncpa [#allocation4], 0  ;;  %s193_s6 = smov [#allocation2]  }
   0x2   :  { %s14_s7 = sshll.u32 %s193_s6, 4  ;;  %s15_s7 = int_to_ptr.vmem [resolvable:$true] %s14_s7 }
   0x3   :  { %s157_s8 = scalar_lea.vmem %s15_s7, 256  ;;  %p162_p1 = scmp.lt.s32.totalorder %s15_s7, %s15_s7 }
   0x4   :  { %p158_p0 = scmp.ne.s32.totalorder %s15_s7, %s157_s8  ;;  %p163_p2 = scmp.lt.s32.totalorder %s157_s8, %s157_s8 }
   0x6   :  { %p164_p3 = por %p163_p2, %p162_p1 }
   0x8   :  { %p165_p4 = pnand %p164_p3, %p158_p0 }
   0xa   :  { %168 = shalt.err (!%p165_p4)
}
   0xb   :  { %17 = dma.hbm_to_vmem [thread:$0]  %s215_s0, 256, %s15_s7, [#allocation3]  }
   0xc   :  { %189 = dma.done.wait [#allocation3], 256  }
   0xd   :  { %190 = vsyncadd [#allocation3], 4294967040  ;;  %v21_v0 = vld [vmem:[#allocation2] sm:$0xff]  ;;  %s194_s11 = smov 1   ;;  %s195_s12 = smov 127   ;;  %v22_v1 = vld [vmem:[#allocation2 + $0x8] sm:$0xff]  ;;  %v23_v2 = vlaneseq }
   0xe   :  { %69 = vrot.lane.b32.xlu1 %v21_v0, %s194_s11  ;;  %50 = vrot.lane.b32.xlu0 %v21_v0, %s195_s12  ;;  %s196_s0 = smov 112   ;;  %s197_s13 = smov 16  }
   0xf   :  { %v24_v3 = vand.u32 127, %v23_v2  ;;  %s198_s14 = smov [#allocation5]  }
  0x10   :  { %s134_s15 = sshll.u32 %s198_s14, 4  ;;  %s135_s15 = int_to_ptr.vmem [resolvable:$true] %s134_s15 }
  0x11   :  { %v25_v4 = vadd.s32 128, %v24_v3  ;;  %v30_v5 = vand.u32 15, %v24_v3  ;;  %vm73_vm0 = vcmp.lt.s32.totalorder %v24_v3, 1  ;;  %vm54_vm1 = vcmp.lt.s32.totalorder %v24_v3, 127  ;;  %s169_s16 = scalar_lea.vmem %s135_s15, 256  ;;  %p174_p6 = scmp.lt.s32.totalorder %s135_s15, %s135_s15 }
  0x12   :  { %71 = vrot.lane.b32.xlu1 %v22_v1, %s194_s11  ;;  %52 = vrot.lane.b32.xlu0 %v22_v1, %s195_s12  ;;  %vm92_vm6 = vcmp.lt.s32.totalorder %v24_v3, 112  ;;  %v114_v28 = vadd.s32 4294967280, %v24_v3  ;;  %vm111_vm8 = vcmp.lt.s32.totalorder %v24_v3, 16  ;;  %p170_p5 = scmp.ne.s32.totalorder %s135_s15, %s169_s16  ;;  %p175_p7 = scmp.lt.s32.totalorder %s169_s16, %s169_s16 }
  0x13   :  { %v37_v6 = vand.u32 15, %v25_v4  ;;  %v57_v7 = vadd.s32 1, %v30_v5  ;;  %v76_v11 = vadd.s32 4294967295, %v30_v5  ;;  %v96_v27 = vadd.s32 16, %v25_v4 }
  0x14   :  { %vm116_vm9 = vcmp.ge.s32.totalorder %v114_v28, 0  ;;  %p176_p8 = por %p175_p7, %p174_p6 }
  0x15   :  { %v58_v8 = vadd.s32 1, %v37_v6  ;;  %v77_v12 = vadd.s32 4294967295, %v37_v6  ;;  %vm61_vm2 = vcmp.lt.s32.totalorder %v57_v7, 16  ;;  %vm78_vm4 = vcmp.ge.s32.totalorder %v76_v11, 0 }
  0x16   :  { %vm100_vm7 = vcmp.lt.s32.totalorder %v96_v27, 256  ;;  %p177_p9 = pnand %p176_p8, %p170_p5 }
  0x17   :  { %vm62_vm3 = vcmp.lt.s32.totalorder %v58_v8, 16  ;;  %vm79_vm5 = vcmp.ge.s32.totalorder %v77_v12, 0 }
  0x80   :  { %v70_v9 = vpop.permute.xlu1 %69  ;;  %v51_v10 = vpop.permute.xlu0 %50 }
  0x84   :  { %v72_v13 = vpop.permute.xlu1 %71  ;;  %v53_v14 = vpop.permute.xlu0 %52 }
  0x85   :  { %v74_v15 = vsel %vm73_vm0, %v70_v9, %v72_v13  ;;  %v75_v16 = vsel %vm73_vm0, %v72_v13, %v70_v9  ;;  %v55_v17 = vsel %vm54_vm1, %v51_v10, %v53_v14  ;;  %v56_v18 = vsel %vm54_vm1, %v53_v14, %v51_v10 }
  0x86   :  { %v65_v19 = vsel %vm61_vm2, %v55_v17, inf  ;;  %v66_v20 = vsel %vm62_vm3, %v56_v18, inf  ;;  %v84_v23 = vsel %vm78_vm4, %v75_v16, inf  ;;  %v85_v24 = vsel %vm79_vm5, %v74_v15, inf }
  0x87   :  { %v67_v21 = vmin.f32 %v21_v0, %v65_v19  ;;  %v68_v22 = vmin.f32 %v22_v1, %v66_v20 }
  0x89   :  { %v87_v25 = vmin.f32 %v68_v22, %v85_v24  ;;  %v86_v26 = vmin.f32 %v67_v21, %v84_v23 }
  0x8b   :  { %90 = vrot.lane.b32.xlu1 %v87_v25, %s196_s0  ;;  %88 = vrot.lane.b32.xlu0 %v86_v26, %s196_s0 }
  0x8f   :  { %109 = vrot.lane.b32.xlu1 %v87_v25, %s197_s13  ;;  %107 = vrot.lane.b32.xlu0 %v86_v26, %s197_s13 }
  0xfd   :  { %v91_v29 = vpop.permute.xlu1 %90  ;;  %v89_v30 = vpop.permute.xlu0 %88 }
  0xfe   :  { %v94_v31 = vsel %vm92_vm6, %v91_v29, %v89_v30  ;;  %v93_v32 = vsel %vm92_vm6, %v89_v30, %v91_v29 }
  0xff   :  { %v104_v33 = vsel %vm100_vm7, %v94_v31, inf  ;;  %v105_v37 = vmin.f32 %v86_v26, %v93_v32 }
 0x100   :  { %v106_v34 = vmin.f32 %v87_v25, %v104_v33 }
 0x101   :  { %v110_v35 = vpop.permute.xlu1 %109  ;;  %v108_v36 = vpop.permute.xlu0 %107 }
 0x102   :  { %v112_v38 = vsel %vm111_vm8, %v108_v36, %v110_v35  ;;  %v113_v39 = vsel %vm111_vm8, %v110_v35, %v108_v36 }
 0x103   :  { %v122_v40 = vsel %vm116_vm9, %v113_v39, inf  ;;  %v125_v41 = vmin.f32 %v106_v34, %v112_v38 }
 0x104   :  { %v124_v42 = vmin.f32 %v105_v37, %v122_v40 }
 0x105   :  { %127 = vst [vmem:[#allocation5 + $0x8] sm:$0xff] %v125_v41 }
 0x106   :  { %126 = vst [vmem:[#allocation5] sm:$0xff] %v124_v42 }
 0x107   :  { %180 = shalt.err (!%p177_p9)
}
 0x108   :  { %137 = dma.vmem_to_hbm [thread:$0]  %s135_s15, 256, %s216_s1, [#allocation4]  }
 0x109   :  { %191 = dma.done.wait [#allocation4], 256  }
 0x10a   :  { %192 = vsyncadd [#allocation4], 4294967040 }
 0x10b   :  { %141 = vsyncpa [#allocation3], 1 }
 0x10c   :  { %142 = vsyncpa [#allocation4], 1 }

</bundles_post_ra>
